<compile_context>
chip_gen: v7x
topology: tpu7x:2x2x1
jax: 0.10.0
libtpu: 0.0.40
codegen_flags: <defaults>
</compile_context>

<pallas_src>
import math

import jax
import jax.numpy as jnp
from jax.experimental import pallas as pl
from jax.experimental.pallas import tpu as pltpu

_NUM_PARTIALS = 2            # leading "parallel" grid axis -> both TCs on v7x
_LANES = 128
_SUBLANES = 8
_VMEM_BLOCK_BUDGET = 1 << 20  # ~1 MiB per (lane-padded) f32 input block


def _round_up(x, m):
    return ((x + m - 1) // m) * m


def _cce_kernel(n_rows, n_cols, tile_rows, blocks_per_partial):
    """Builds the kernel; all sizes are Python ints closed over."""

    def kernel(yp_ref, yt_ref, out_ref, acc_ref):
        p = pl.program_id(0)   # partial-sum slice (parallel across TCs on v7x)
        i = pl.program_id(1)   # sequential row-block index within the slice

        # init the (1, C) accumulator at the start of each slice
        @pl.when(i == 0)
        def _():
            acc_ref[...] = jnp.zeros_like(acc_ref)

        # Global (unclamped) row block for this step.  The index_map clamps
        # the DMA so it always reads in-range data; rows >= n_rows (ragged
        # tail or fully out-of-range blocks) are masked out here instead of
        # padding the arrays in HBM.
        rb = p * blocks_per_partial + i
        row0 = rb * tile_rows
        row_ids = row0 + jax.lax.broadcasted_iota(
            jnp.int32, (tile_rows, n_cols), 0)
        valid = row_ids < n_rows

        yp = jnp.where(valid, yp_ref[...].astype(jnp.float32), jnp.float32(1.0))
        yt = jnp.where(valid, yt_ref[...].astype(jnp.float32), jnp.float32(0.0))
        prod = yt * jnp.log(yp + jnp.float32(1e-8))

        # Fold the whole tile into a one-vreg accumulator: no large VMEM
        # accumulator traffic in the steady state.
        acc_ref[...] += jnp.sum(prod, axis=0, keepdims=True)

        # Finalize this slice's partial sum on its last sequential step.
        @pl.when(i == pl.num_programs(1) - 1)
        def _():
            partial = jnp.sum(acc_ref[...])
            out_ref[...] = jnp.full(out_ref.shape, partial, jnp.float32)

    return kernel


def loss_cce(y_prim, y, *, max_tile_rows=2048):
    """-mean(y * log(y_prim + 1e-8)) computed in a Pallas TPU kernel."""
    assert y_prim.shape == y.shape
    assert y_prim.ndim >= 1
    total = math.prod(int(d) for d in y_prim.shape)

    # Collapse leading dims (free, row-major reshape -> no HBM copy, no pad).
    n_cols = int(y_prim.shape[-1])
    yp2 = y_prim.reshape(-1, n_cols)
    yt2 = y.reshape(-1, n_cols)
    n_rows = int(yp2.shape[0])

    # Row-tile: multiple of 8 sublanes, sized so the lane-padded f32 block
    # stays ~<=1 MiB (2 inputs x 2 pipeline buffers -> a few MiB of VMEM,
    # inside every generation's scoped-VMEM default).
    lane_padded_cols = _round_up(n_cols, _LANES)
    budget_rows = max(
        _SUBLANES,
        (_VMEM_BLOCK_BUDGET // (lane_padded_cols * 4)) // _SUBLANES * _SUBLANES,
    )
    tile_rows = min(_round_up(n_rows, _SUBLANES),
                    _round_up(max_tile_rows, _SUBLANES),
                    budget_rows)

    num_row_blocks = pl.cdiv(n_rows, tile_rows)
    blocks_per_partial = pl.cdiv(num_row_blocks, _NUM_PARTIALS)

    def in_map(p, i):
        rb = p * blocks_per_partial + i
        # Clamp so the DMA always targets a valid block; out-of-range blocks
        # are fully masked inside the kernel and contribute exactly 0.
        return (jnp.minimum(rb, num_row_blocks - 1), 0)

    out = pl.pallas_call(
        _cce_kernel(n_rows, n_cols, tile_rows, blocks_per_partial),
        out_shape=jax.ShapeDtypeStruct(
            (_NUM_PARTIALS, _SUBLANES, _LANES), jnp.float32),
        grid_spec=pltpu.PrefetchScalarGridSpec(
            num_scalar_prefetch=0,
            grid=(_NUM_PARTIALS, blocks_per_partial),
            in_specs=[
                pl.BlockSpec((tile_rows, n_cols), in_map),
                pl.BlockSpec((tile_rows, n_cols), in_map),
            ],
            out_specs=pl.BlockSpec((1, _SUBLANES, _LANES),
                                   lambda p, i: (p, 0, 0)),
            scratch_shapes=[pltpu.VMEM((1, n_cols), jnp.float32)],
        ),
        compiler_params=pltpu.CompilerParams(
            dimension_semantics=("parallel", "arbitrary"),
        ),
    )(yp2, yt2)

    partials = out[:, 0, 0]
    return -jnp.sum(partials) / jnp.float32(total)


if __name__ == "__main__":
    key = jax.random.PRNGKey(0)
    k1, k2, k3, k4 = jax.random.split(key, 4)

    # Iris-like setup: 3 classes, small batch of 16.
    N, C = 16, 3
    logits = jax.random.normal(k1, (N, C), dtype=jnp.float32)
    y_prim = jax.nn.softmax(logits, axis=-1)                 # predicted probs
    labels = jax.random.randint(k2, (N,), 0, C)
    y = jax.nn.one_hot(labels, C, dtype=jnp.float32)         # one-hot targets

    loss = jax.block_until_ready(loss_cce(y_prim, y))
    ref = -jnp.mean(y * jnp.log(y_prim + 1e-8))
    assert jnp.allclose(loss, ref, rtol=1e-5, atol=1e-6), (loss, ref)

    # Second check: ragged row tail + multiple blocks per parallel slice.
    N2, C2 = 37, 5
    logits2 = jax.random.normal(k3, (N2, C2), dtype=jnp.float32)
    y_prim2 = jax.nn.softmax(logits2, axis=-1)
    labels2 = jax.random.randint(k4, (N2,), 0, C2)
    y2 = jax.nn.one_hot(labels2, C2, dtype=jnp.float32)

    loss2 = jax.block_until_ready(loss_cce(y_prim2, y2, max_tile_rows=8))
    ref2 = -jnp.mean(y2 * jnp.log(y_prim2 + 1e-8))
    assert jnp.allclose(loss2, ref2, rtol=1e-5, atol=1e-6), (loss2, ref2)

    print("KERNEL_OK")
</pallas_src>

<mosaic_0001>
module attributes {stable_mosaic.version = 11 : i64} {
  func.func @kernel(%arg0: i32, %arg1: i32, %arg2: memref<16x3xf32, #tpu.memory_space<vmem>>, %arg3: memref<16x3xf32, #tpu.memory_space<vmem>>, %arg4: memref<1x8x128xf32, #tpu.memory_space<vmem>>, %arg5: memref<1x3xf32, #tpu.memory_space<vmem>>) attributes {dimension_semantics = [#tpu.dimension_semantics<parallel>, #tpu.dimension_semantics<arbitrary>], iteration_bounds = array<i64: 2, 1>, scalar_prefetch = 0 : i64, scratch_operands = 1 : i64, tpu.core_type = #tpu.core_type<tc>, window_params = [{transform_indices = @transform_0, window_bounds = array<i64: 16, 3>}, {transform_indices = @transform_1, window_bounds = array<i64: 16, 3>}, {transform_indices = @transform_2, window_bounds = array<i64: 1, 8, 128>}]} {
    %c0_i32 = arith.constant 0 : i32
    %0 = arith.cmpi eq, %arg1, %c0_i32 : i32
    %1 = arith.extui %0 : i1 to i32
    %c0_i32_0 = arith.constant 0 : i32
    %2 = arith.cmpi ne, %1, %c0_i32_0 : i32
    scf.if %2 {
      %cst_14 = arith.constant 0.000000e+00 : f32
      %29 = vector.broadcast %cst_14 : f32 to vector<1x3xf32>
      %c0_15 = arith.constant 0 : index
      %c0_16 = arith.constant 0 : index
      %30 = vector.load %arg5[%c0_15, %c0_16] : memref<1x3xf32, #tpu.memory_space<vmem>>, vector<1x3xf32>
      tpu.vector_store %arg5[%c0_15, %c0_16], %29 {strides = array<i32>} : memref<1x3xf32, #tpu.memory_space<vmem>>, vector<1x3xf32>,
    } else {
    }
    %c1_i32 = arith.constant 1 : i32
    %3 = arith.muli %arg0, %c1_i32 : i32
    %4 = arith.addi %3, %arg1 : i32
    %c16_i32 = arith.constant 16 : i32
    %5 = arith.muli %4, %c16_i32 : i32
    %6 = tpu.iota {dimensions = array<i32: 0>} : vector<16x3xi32>
    %7 = vector.broadcast %5 : i32 to vector<16x3xi32>
    %8 = arith.addi %7, %6 : vector<16x3xi32>
    %c16_i32_1 = arith.constant 16 : i32
    %9 = vector.broadcast %c16_i32_1 : i32 to vector<16x3xi32>
    %10 = arith.cmpi slt, %8, %9 : vector<16x3xi32>
    %c0 = arith.constant 0 : index
    %c0_2 = arith.constant 0 : index
    %11 = vector.load %arg2[%c0, %c0_2] : memref<16x3xf32, #tpu.memory_space<vmem>>, vector<16x3xf32>
    %cst = arith.constant 1.000000e+00 : f32
    %12 = vector.broadcast %cst : f32 to vector<16x3xf32>
    %13 = arith.select %10, %11, %12 : vector<16x3xi1>, vector<16x3xf32>
    %c0_3 = arith.constant 0 : index
    %c0_4 = arith.constant 0 : index
    %14 = vector.load %arg3[%c0_3, %c0_4] : memref<16x3xf32, #tpu.memory_space<vmem>>, vector<16x3xf32>
    %cst_5 = arith.constant 0.000000e+00 : f32
    %15 = vector.broadcast %cst_5 : f32 to vector<16x3xf32>
    %16 = arith.select %10, %14, %15 : vector<16x3xi1>, vector<16x3xf32>
    %cst_6 = arith.constant 9.99999993E-9 : f32
    %17 = vector.broadcast %cst_6 : f32 to vector<16x3xf32>
    %18 = arith.addf %13, %17 : vector<16x3xf32>
    %19 = math.log %18 : vector<16x3xf32>
    %20 = arith.mulf %16, %19 : vector<16x3xf32>
    %c0_7 = arith.constant 0 : index
    %c0_8 = arith.constant 0 : index
    %21 = vector.load %arg5[%c0_7, %c0_8] : memref<1x3xf32, #tpu.memory_space<vmem>>, vector<1x3xf32>
    %cst_9 = arith.constant dense<0.000000e+00> : vector<3xf32>
    %22 = vector.multi_reduction <add>, %20, %cst_9 [0] : vector<16x3xf32> to vector<3xf32>
    %23 = vector.shape_cast %22 : vector<3xf32> to vector<1x3xf32>
    %24 = arith.addf %21, %23 : vector<1x3xf32>
    %c0_10 = arith.constant 0 : index
    %c0_11 = arith.constant 0 : index
    %25 = vector.load %arg5[%c0_10, %c0_11] : memref<1x3xf32, #tpu.memory_space<vmem>>, vector<1x3xf32>
    tpu.vector_store %arg5[%c0_10, %c0_11], %24 {strides = array<i32>} : memref<1x3xf32, #tpu.memory_space<vmem>>, vector<1x3xf32>,
    %c0_i32_12 = arith.constant 0 : i32
    %26 = arith.cmpi eq, %arg1, %c0_i32_12 : i32
    %27 = arith.extui %26 : i1 to i32
    %c0_i32_13 = arith.constant 0 : i32
    %28 = arith.cmpi ne, %27, %c0_i32_13 : i32
    scf.if %28 {
      %c0_14 = arith.constant 0 : index
      %c0_15 = arith.constant 0 : index
      %29 = vector.load %arg5[%c0_14, %c0_15] : memref<1x3xf32, #tpu.memory_space<vmem>>, vector<1x3xf32>
      %30 = vector.shape_cast %29 : vector<1x3xf32> to vector<1x1x3xf32>
      %cst_16 = arith.constant dense<0.000000e+00> : vector<1xf32>
      %31 = vector.multi_reduction <add>, %30, %cst_16 [1, 2] : vector<1x1x3xf32> to vector<1xf32>
      %32 = vector.shape_cast %31 : vector<1xf32> to vector<1x1x1xf32>
      %33 = vector.extract %32[0, 0, 0] : f32 from vector<1x1x1xf32>
      %34 = vector.broadcast %33 : f32 to vector<1x8x128xf32>
      %c0_17 = arith.constant 0 : index
      %c0_18 = arith.constant 0 : index
      %c0_19 = arith.constant 0 : index
      %35 = vector.load %arg4[%c0_17, %c0_18, %c0_19] : memref<1x8x128xf32, #tpu.memory_space<vmem>>, vector<1x8x128xf32>
      tpu.vector_store %arg4[%c0_17, %c0_18, %c0_19], %34 {strides = array<i32>} : memref<1x8x128xf32, #tpu.memory_space<vmem>>, vector<1x8x128xf32>,
    } else {
    }
    return
  }
  func.func @transform_0(%arg0: i32, %arg1: i32) -> (i32, i32) {
    %c1_i32 = arith.constant 1 : i32
    %0 = arith.muli %arg0, %c1_i32 : i32
    %1 = arith.addi %0, %arg1 : i32
    %c0_i32 = arith.constant 0 : i32
    %2 = arith.minsi %1, %c0_i32 : i32
    %c0_i32_0 = arith.constant 0 : i32
    %c0_i32_1 = arith.constant 0 : i32
    return %2, %c0_i32_0 : i32, i32
  }
  func.func @transform_1(%arg0: i32, %arg1: i32) -> (i32, i32) {
    %c1_i32 = arith.constant 1 : i32
    %0 = arith.muli %arg0, %c1_i32 : i32
    %1 = arith.addi %0, %arg1 : i32
    %c0_i32 = arith.constant 0 : i32
    %2 = arith.minsi %1, %c0_i32 : i32
    %c0_i32_0 = arith.constant 0 : i32
    %c0_i32_1 = arith.constant 0 : i32
    return %2, %c0_i32_0 : i32, i32
  }
  func.func @transform_2(%arg0: i32, %arg1: i32) -> (i32, i32, i32) {
    %c0_i32 = arith.constant 0 : i32
    %c0_i32_0 = arith.constant 0 : i32
    %c0_i32_1 = arith.constant 0 : i32
    return %arg0, %c0_i32, %c0_i32_0 : i32, i32, i32
  }
}

</mosaic_0001>

<bundles_post_ra>
// kernel: tpu_custom_call.1
= control target key start
LH: loop header
LB: loop body
LE: loop exit
PB: predicated region body
PF: predicated region fallthrough
CT: control target
= control target key end

     0   :  { %7 = vsyncpa [#allocation4], 0  ;;  %s670_s0 = inlined_call_operand.vmem [shape: f32[16,3], index: 0, kind: input, shape index: {}]   ;;  %s671_s1 = inlined_call_operand.vmem [shape: f32[16,3], index: 1, kind: input, shape index: {}]   ;;  %s672_s2 = inlined_call_operand.hbm [shape: f32[2,8,128], index: 2, kind: output, shape index: {}]  }
   0x1   :  { %9 = vsyncpa [#allocation4 + $0x1], 0  ;;  %s549_s9 = smov 0   ;;  %s551_s10 = smov 0  }
   0x2   :  { %s553_s11 = smov 0   ;;  %s555_s12 = smov 0  }
   0x3   :  { %s557_s13 = smov 0   ;;  %s559_s14 = smov 0  }
   0x4 LB: > { %s375_s15 = sadd.s32 4294967295, %s530_s14   ;;  %s376_s16 = sadd.s32 4294967294, %s530_s14   ;;  %s530_s14 = sphi %s559_s14, %s15_s14   ;;  %s526_s13 = sphi %s557_s13, %s679_s13   ;;  %s522_s12 = sphi %s555_s12, %s678_s12   ;;  %s518_s11 = sphi %s553_s11, %s677_s11   ;;  %s514_s10 = sphi %s551_s10, %s676_s10   ;;  %s510_s9 = sphi %s549_s9, %s675_s9  }
   0x5   : > { %s27_s17 = sadd.s32 1, %s526_s13  ;;  %s98_s18 = sadd.s32 1, %s518_s11 }
   0x6   : > { %p29_p0 = scmp.ge.s32.totalorder %s27_s17, 2  ;;  %p108_p1 = scmp.ne.s32.totalorder %s518_s11, %s514_s10 }
   0x7   : > { %p109_p2 = scmp.eq.s32.totalorder %s375_s15, 1  ;;  %p114_p3 = scmp.ne.s32.totalorder %s514_s10, %s510_s9 }
   0x8   : > { %s681_s17 = smov (%p29_p0, %s27_s17), 0  ;;  %p115_p5 = scmp.eq.s32.totalorder %s376_s16, 1 }
   0x9   : > { %p589_p4 = por %p109_p2, %p108_p1  ;;  %s95_s20 = ssub.s32 %s526_s13, %s681_s17 }
   0xa   : > { %p379_p6 = scmp.ge.s32.totalorder %s530_s14, 1  ;;  %p96_p7 = scmp.eq.s32.totalorder %s95_s20, 0 }
   0xb   : > { %p596_p8 = por %p115_p5, %p114_p3  ;;  %p163_p9 = scmp.lt.s32.totalorder %s530_s14, 3 }
   0xc   : > { %s602_s22 = scalar_select %p96_p7, %s518_s11, %s98_s18  }
   0xd   : > { %p164_p10 = pnand %p379_p6, %p163_p9 }
   0xe   : > { %p197_p11 = scmp.lt.s32.totalorder (!%p164_p10), %s522_s12, 0  ;;  %vm224_vm0 = vcmask (!%p164_p10), 16384   ;;  %s385_s23 = sshll.u32 (!%p164_p10), %s522_s12, 4  ;;  %v228_v0 = vlaneseq (!%p164_p10)  ;;  %v532_v1 = vmov (!%p164_p10), 0.0   ;;  %vm253_vm3 = vcmask (!%p164_p10), 23552  }
   0xf   : > { %167 = sbr.rel (%p164_p10) target bundleno = 295 (0x127), region = 28  ;;  %225 = vst.msk [vmem:[#allocation2] sm:$0x1] (!%p164_p10), %vm224_vm0, %v532_v1  ;;  %v231_v3 = vstv (!%p164_p10), %s385_s23  ;;  %s193_s5 = sand.u32 (!%p164_p10), 1, %s514_s10  }
  0x10   : > { %v229_v2 = vshrl.u32 (!%p164_p10), %v228_v0, 7  ;;  %s380_s6 = sshll.u32 (!%p164_p10), %s193_s5, 3  ;;  %s387_s15 = sshll.u32 (!%p164_p10), %s522_s12, 7 }
  0x11   : > { %s195_s7 = scalar_lea.vmem (!%p164_p10), [#allocation3], %s380_s6  ;;  %s625_s23 = scalar_lea.hbm (!%p164_p10), %s672_s2, %s387_s15 }
  0x12   : > { %v230_v4 = vadd.s32 (!%p164_p10), 8, %v229_v2  ;;  %v232_v5 = vadd.s32 (!%p164_p10), %v231_v3, %v229_v2  ;;  %s296_s8 = sshll.u32 (!%p164_p10), %s195_s7, 4  ;;  %s620_s8 = int_to_ptr.vmem [resolvable:$true] %s296_s8 }
  0x14   : > { %v233_v6 = vadd.s32 (!%p164_p10), %v231_v3, %v230_v4  ;;  %vm234_vm1 = vcmp.lt.s32.totalorder (!%p164_p10), %v232_v5, 16 }
  0x16   : > { %s198_s24 = scalar_select %p197_p11, %s522_s12, 0  ;;  %vm235_vm2 = vcmp.lt.s32.totalorder %v233_v6, 16  ;;  %v252_v31 = vld [vmem:[#allocation2] sm:$0x1] }
  0x17   : > { %s533_s12 = smov [#allocation3]  }
  0x18   : > { %s381_s25 = sshll.u32 %s198_s24, 1  ;;  %s283_s24 = scalar_lea.sflag [#allocation4], %s193_s5 }
  0x19   : > { %p200_p12 = scmp.lt.s32.totalorder %s381_s25, 1 }
  0x1b   : > { %s683_s25 = smov (!%p200_p12, %s381_s25), 1 }
  0x1c   : > { %s382_s26 = sshll.u32 %s683_s25, 3  ;;  %s452_s25 = scalar_lea.vmem %s620_s8, 128 }
  0x1d   : > { %s203_s29 = scalar_lea.vmem %s670_s0, %s382_s26  ;;  %s215_s4 = scalar_lea.vmem %s671_s1, %s382_s26 }
  0x1e   : > { %v236_v7 = vld [vmem:[%s203_s29] sm:$0xff]  ;;  %v237_v8 = vld [vmem:[%s203_s29 + $0x8] sm:$0xff]  ;;  %p453_p13 = scmp.ne.s32.totalorder %s620_s8, %s452_s25  ;;  %s456_s26 = sshll.u32 %s533_s12, 4  ;;  %s457_s26 = int_to_ptr.vmem [resolvable:$false] %s456_s26 }
  0x1f   : > { %v238_v9 = vsel %vm234_vm1, %v236_v7, 1.0  ;;  %v239_v10 = vsel %vm235_vm2, %v237_v8, 1.0  ;;  %v240_v13 = vld [vmem:[%s215_s4] sm:$0xff]  ;;  %v241_v14 = vld [vmem:[%s215_s4 + $0x8] sm:$0xff]  ;;  %s458_s27 = scalar_lea.vmem %s457_s26, 256  ;;  %p459_p2 = scmp.lt.s32.totalorder %s620_s8, %s457_s26 }
  0x20   : > { %v244_v11 = vadd.f32 1e-08, %v238_v9  ;;  %v245_v12 = vadd.f32 1e-08, %v239_v10  ;;  %v242_v16 = vsel %vm234_vm1, %v240_v13, 0.0  ;;  %v243_v18 = vsel %vm235_vm2, %v241_v14, 0.0  ;;  %p454_p0 = pnand %p453_p13, %p589_p4  ;;  %p460_p3 = scmp.lt.s32.totalorder %s458_s27, %s452_s25 }
  0x22   : > { %448 = vlog2.f32 %v244_v11  ;;  %p455_p1 = pneg %p454_p0  ;;  %p461_p5 = por %p460_p3, %p459_p2 }
  0x23   : > { %450 = vlog2.f32 %v245_v12 }
  0x24   : > { %p462_p6 = pnand %p461_p5, %p455_p1 }
  0x2c   : > { %v449_v15 = vpop.eup %448 }
  0x2d   : > { %v451_v17 = vpop.eup %450  ;;  %v247_v19 = vmul.f32 0.6931472, %v449_v15 }
  0x2e   : > { %v249_v20 = vmul.f32 0.6931472, %v451_v17 }
  0x2f   : > { %v250_v21 = vmul.f32 %v247_v19, %v242_v16 }
  0x30   : > { %v251_v22 = vmul.f32 %v249_v20, %v243_v18 }
  0x31   : > { %v254_v23 = vsel %vm253_vm3, %v250_v21, 0.0 }
  0x32   : > { %v255_v24 = vsel %vm253_vm3, %v251_v22, 0.0 }
  0x33   : > { %v256_v25 = vadd.f32 %v255_v24, %v254_v23 }
  0x35   : > { %v257_v26 = vrot.slane %v256_v25, 4 }
  0x37   : > { %v258_v27 = vadd.f32 %v257_v26, %v256_v25 }
  0x39   : > { %v259_v28 = vrot.slane %v258_v27, 2 }
  0x3b   : > { %v260_v29 = vadd.f32 %v259_v28, %v258_v27 }
  0x3d   : > { %v261_v30 = vrot.slane %v260_v29, 1 }
  0x3f   : > { %v262_v32 = vadd.f32 %v261_v30, %v260_v29 }
  0x41   : > { %v263_v33 = vadd.f32 %v262_v32, %v252_v31 }
  0x43   : > { %265 = vst.msk [vmem:[#allocation2] sm:$0x1] %vm224_vm0, %v263_v33 }
  0x4a   : > { %v269_v34 = vld [vmem:[#allocation2] sm:$0x1] }
  0x4b   : > { %v270_v35 = vsel %vm224_vm0, %v269_v34, 0.0 }
  0x4c   : > { %271 = vadd.xlane.f32.xlu0 %v270_v35 }
  0xd9   : > { %v272_v36 = vpop.xlane.xlu0 %271 }
  0xda   : > { %v273_v37 = vrot.slane %v272_v36, 4 }
  0xdc   : > { %v274_v38 = vadd.f32 %v273_v37, %v272_v36 }
  0xde   : > { %v275_v39 = vrot.slane %v274_v38, 2 }
  0xe0   : > { %v276_v40 = vadd.f32 %v275_v39, %v274_v38 }
  0xe2   : > { %v277_v41 = vrot.slane %v276_v40, 1 }
  0xe4   : > { %v278_v42 = vadd.f32 %v277_v41, %v276_v40 }
  0xe6   : > { %390 = vpush %v278_v42 }
 0x117   : > { %s391_s16 = spop %390 }
 0x118   : > { %v280_v43 = vstv %s391_s16 }
 0x119   : > { %281 = vst [vmem:[%s195_s7] sm:$0xff] %v280_v43 }
 0x11a   : > { %465 = shalt.err (!%p462_p6)
}
 0x11b   : > { %s466_s28 = scalar_lea.hbm %s625_s23, 128  ;;  %s470_s3 = scalar_lea.hbm %s672_s2, 256 }
 0x11c   : > { %p467_p7 = scmp.ne.s32.totalorder %s625_s23, %s466_s28  ;;  %p471_p11 = scmp.lt.u32.totalorder %s625_s23, %s672_s2 }
 0x11d   : > { %p472_p12 = scmp.lt.u32.totalorder %s470_s3, %s466_s28  ;;  %p474_p0 = scmp.lt.u32.totalorder %s466_s28, %s625_s23 }
 0x11e   : > { %p468_p9 = pnand %p467_p7, %p589_p4 }
 0x11f   : > { %p473_p13 = por %p472_p12, %p471_p11 }
 0x120   : > { %p469_p10 = pneg %p468_p9 }
 0x121   : > { %p475_p1 = por %p474_p0, %p473_p13 }
 0x123   : > { %p476_p2 = pnand %p475_p1, %p469_p10 }
 0x125   : > { %479 = shalt.err (!%p476_p2)
}
 0x126   : > { %392 = dma.vmem_to_hbm [thread:$0]  (%p589_p4), %s620_s8, 128, %s625_s23, %s283_s24  }
 0x127 PF: > { %p398_p3 = scmp.ge.s32.totalorder %s530_s14, 2  ;;  %s308_s6 = sand.u32 1, %s510_s9  }
 0x128   : > { %s309_s7 = scalar_lea.sflag [#allocation4], %s308_s6 }
 0x129   : > { %p395_p5 = pnand %p398_p3, %p596_p8 }
 0x12b   : > { %505 = dma.done.wait (!%p395_p5), %s309_s7, 128  }
 0x12c   : > { %507 = vsyncadd (!%p395_p5), %s309_s7, 4294967168  ;;  %s15_s14 = sadd.s32 1, %s530_s14   ;;  %s675_s9 = smov %s514_s10 }
 0x12d   : > { %p12_p6 = scmp.ge.s32.totalorder %s15_s14, 4   ;;  %s676_s10 = smov %s518_s11 }
 0x12e   : > { %s677_s11 = smov %s602_s22  ;;  %s678_s12 = smov %s526_s13 }
 0x12f   : > { %s679_s13 = smov %s681_s17  ;;  %14 = sbr.rel (!%p12_p6) target bundleno = 4 (0x4), region = 74 }
 0x136   :  { %314 = vsyncpa [#allocation4], 1 }
 0x137   :  { %316 = vsyncpa [#allocation4 + $0x1], 1 }

</bundles_post_ra>
